<compile_context>
chip_gen: v7x
topology: tpu7x:2x2x1
jax: 0.10.0
libtpu: 0.0.40
codegen_flags: <defaults>
</compile_context>

<pallas_src>
import functools

import jax
import jax.numpy as jnp
from jax import lax
from jax.experimental import pallas as pl
from jax.experimental.pallas import tpu as pltpu


def _soft_q_kernel(logits_ref, tgt_logits_ref, q_ref, rewards_ref,
                   lens_ref, disc_ref, out_ref,
                   m_x, l_x, m_y, l_y, *, gamma, tau, inv_tau):
    k = pl.program_id(1)               # vocab-tile index (reduction axis)
    nk = pl.num_programs(1)
    TB, T, TV = logits_ref.shape

    @pl.when(k == 0)
    def _():
        m_x[...] = jnp.full_like(m_x, -jnp.inf)
        l_x[...] = jnp.zeros_like(l_x)
        m_y[...] = jnp.full_like(m_y, -jnp.inf)
        l_y[...] = jnp.zeros_like(l_y)

    # Stream tiles in native dtype, cast in-register (f32 temps are accounted
    # for in the wrapper's VMEM tile budget).
    x = logits_ref[...].astype(jnp.float32)       # [TB, T, TV]
    y = tgt_logits_ref[...].astype(jnp.float32)   # [TB, T, TV]
    zx = x * inv_tau if inv_tau != 1.0 else x     # static tau==1 fast path
    zy = y * inv_tau if inv_tau != 1.0 else y

    # ---- online logsumexp over vocab tiles (for V and V_) ----
    def _update(m_ref, l_ref, z):
        tile_max = jnp.max(z, axis=-1)                              # [TB, T]
        m_new = jnp.maximum(m_ref[...], tile_max)
        l_ref[...] = (jnp.exp(m_ref[...] - m_new) * l_ref[...]
                      + jnp.sum(jnp.exp(z - m_new[:, :, None]), axis=-1))
        m_ref[...] = m_new

    _update(m_x, l_x, zx)
    _update(m_y, l_y, zy)

    # ---- finalize on the last vocab tile ----
    @pl.when(k == nk - 1)
    def _():
        lse_x = m_x[...] + jnp.log(l_x[...])                        # [TB, T]
        lse_y = m_y[...] + jnp.log(l_y[...])
        V = lse_x * tau if tau != 1.0 else lse_x
        V_ = lse_y * tau if tau != 1.0 else lse_y

        Q = jnp.reshape(q_ref[...], (TB, T))
        rewards = jnp.reshape(rewards_ref[...], (TB, T))
        lengths = jnp.reshape(lens_ref[...], (TB, 1))               # int32
        A = Q - V

        col = lax.broadcasted_iota(jnp.int32, (TB, T), 1)
        mask = (col < lengths).astype(jnp.float32)                  # seq mask

        # ---- single-step PCL (Eq. 15) ----
        # V_next[b, t] = V_[b, t+1].  XLU roll when T is lane-aligned (the
        # production case); a tiny [T, T] shift matmul for small/odd T.  Any
        # wrap-around / out-of-range element is either overwritten by the
        # terminal select below or killed by `mask`.
        if T % 128 == 0:
            V_next = pltpu.roll(V_, shift=T - 1, axis=1)   # == roll(V_, -1)
        else:
            row_i = lax.broadcasted_iota(jnp.int32, (T, T), 0)
            col_i = lax.broadcasted_iota(jnp.int32, (T, T), 1)
            shift_mat = (row_i == col_i + 1).astype(jnp.float32)
            V_next = jnp.dot(V_, shift_mat, preferred_element_type=jnp.float32)

        a_hat = jnp.where(col == lengths - 1,
                          rewards - V_,                       # terminal step
                          gamma * V_next - V_ + rewards)      # non-terminal
        s_pcl = (A - a_hat) ** 2

        # ---- multi-step PCL (Eq. 17), fused single matmul ----
        # A2 - R == ((A - rewards) * mask) @ disc
        disc = disc_ref[...]                                        # [T, T]
        AR = jnp.dot((A - rewards) * mask, disc,
                     preferred_element_type=jnp.float32)
        m_pcl = (AR + V_) ** 2

        # ---- mix, mask, reduce over this batch block ----
        raw = 0.5 * (s_pcl + m_pcl)
        # Clamp: fully-padded rows (length 0) contribute 0 instead of NaN.
        lens_f = jnp.maximum(lengths, 1).astype(jnp.float32)        # [TB, 1]
        partial = jnp.sum(raw * mask * pl.reciprocal(lens_f))
        out_ref[...] = jnp.reshape(partial, (1, 1, 1))


class SoftQLearningCriterion:
    """JAX/Pallas port of the PyTorch SoftQLearningCriterion forward pass."""

    def __init__(self, padding_idx, label_smoothing, report_accuracy=False,
                 reward_shaping=False, old_r_min=0.0, old_r_max=1.0,
                 new_r_min=-0.5, new_r_max=0.5, gamma_pcl=1.0, tau_pcl=1.0):
        self.padding_idx = padding_idx
        self.eps = label_smoothing          # unused in forward (matches PyTorch)
        self.gamma = float(gamma_pcl)
        self.tau = float(tau_pcl)
        if reward_shaping:
            scale = (new_r_max - new_r_min) / (old_r_max - old_r_min)
            self._reward_shaping_func = lambda r: (r - old_r_min) * scale + new_r_min
        else:
            self._reward_shaping_func = lambda r: r

    def __call__(self, logits, tgt_logits, sample):
        loss = self.compute_loss(logits, sample, tgt_logits=tgt_logits)
        logging_output = {'loss': loss, 'nsentences': sample['target'].shape[0]}
        return loss, logging_output

    def compute_loss(self, logits, sample, tgt_logits=None, reduce=True):
        target = sample['target'].astype(jnp.int32)
        B, T, V = logits.shape
        lengths = jnp.sum((target != self.padding_idx).astype(jnp.int32), axis=-1)

        rewards = self._reward_shaping_func(sample['rewards']).astype(jnp.float32)
        if rewards.ndim == 1:
            rewards = jnp.zeros((B, T), jnp.float32).at[
                jnp.arange(B), lengths - 1].set(rewards)

        # Gather Q = logits[b, t, target[b, t]] once here (tiny HBM gather);
        # removes the per-vocab-tile one-hot select from the kernel hot loop.
        Q = jnp.take_along_axis(logits, target[..., None], axis=-1)[..., 0]
        Q = Q.astype(jnp.float32)

        # Discount matrix replacing F.conv1d:
        # out[b, t] = sum_{s >= t} gamma^(s-t) * x[b, s]   =>   out = x @ disc
        si = jnp.arange(T)[:, None]
        ti = jnp.arange(T)[None, :]
        disc = jnp.where(si >= ti,
                         self.gamma ** (si - ti).astype(jnp.float32),
                         0.0).astype(jnp.float32)

        # ---- batch tiling: >= 2 blocks whenever B >= 2 (megacore on v7x) ----
        if B >= 2:
            TB = 1
            for d in range(min(8, B // 2), 0, -1):
                if B % d == 0:
                    TB = d
                    break
        else:
            TB = B
        nb = B // TB

        # ---- generation-aware VMEM budgets ----------------------------------
        try:
            vmem_cap = int(getattr(pltpu.get_tpu_info(),
                                   "vmem_capacity_bytes", 64 << 20))
        except Exception:  # pragma: no cover - conservative fallback
            vmem_cap = 64 << 20
        if vmem_cap >= (96 << 20):        # v5e / v6e: 128 MiB physical VMEM
            input_budget = 64 << 20
            vmem_limit = 100 << 20
        else:                             # v7x (64 MiB) or unknown
            input_budget = 24 << 20
            vmem_limit = 48 << 20
        vmem_limit = min(vmem_limit, max(vmem_cap - (8 << 20), 32 << 20))

        # ---- vocab tiling: biggest lane-dense tile that fits the budget.
        # bytes/element = 4*elem (2 inputs x 2 pipeline buffers, native dtype)
        #               + 2*4    (in-kernel f32 working copies of both tiles)
        elem = jnp.dtype(logits.dtype).itemsize
        per_lane_bytes = TB * T * (4 * elem + 8)
        tv_max = max(128, (input_budget // per_lane_bytes) // 128 * 128)
        V128 = ((V + 127) // 128) * 128
        tv_max = min(tv_max, V128)

        TV = None
        if V % 128 == 0:
            if V <= tv_max:
                TV = V                    # single vocab tile, no padding
            else:
                d = tv_max
                while d >= 128:           # largest 128-multiple divisor of V
                    if V % d == 0:
                        TV = d
                        break
                    d -= 128
        if TV is None:
            for cand in (8192, 4096, 2048, 1024, 512, 256, 128):
                if cand <= tv_max:
                    TV = cand
                    break
            if TV is None:
                TV = 128
        Vp = ((V + TV - 1) // TV) * TV
        nk = Vp // TV

        if Vp > V:
            # Pad vocab with the dtype's most-negative value: exp()==0 in the
            # logsumexp and never selected by the running max (every vocab
            # tile contains at least one real column).
            pad_val = float(jnp.finfo(logits.dtype).min)
            pad = ((0, 0), (0, 0), (0, Vp - V))
            logits_in = jnp.pad(logits, pad, constant_values=pad_val)
            tgt_logits_in = jnp.pad(tgt_logits, pad, constant_values=pad_val)
        else:
            logits_in = logits
            tgt_logits_in = tgt_logits

        kernel = functools.partial(_soft_q_kernel, gamma=self.gamma,
                                   tau=self.tau, inv_tau=1.0 / self.tau)
        partials = pl.pallas_call(
            kernel,
            out_shape=jax.ShapeDtypeStruct((nb, 1, 1), jnp.float32),
            grid=(nb, nk),
            in_specs=[
                pl.BlockSpec((TB, T, TV), lambda b, k: (b, 0, k)),
                pl.BlockSpec((TB, T, TV), lambda b, k: (b, 0, k)),
                pl.BlockSpec((TB, 1, T), lambda b, k: (b, 0, 0)),
                pl.BlockSpec((TB, 1, T), lambda b, k: (b, 0, 0)),
                pl.BlockSpec((TB, 1, 1), lambda b, k: (b, 0, 0)),
                pl.BlockSpec((T, T), lambda b, k: (0, 0)),
            ],
            out_specs=pl.BlockSpec((1, 1, 1), lambda b, k: (b, 0, 0)),
            scratch_shapes=[pltpu.VMEM((TB, T), jnp.float32)] * 4,
            compiler_params=pltpu.CompilerParams(
                dimension_semantics=("parallel", "arbitrary"),
                vmem_limit_bytes=vmem_limit),
        )(logits_in, tgt_logits_in, Q[:, None, :], rewards[:, None, :],
          lengths[:, None, None], disc)
        return jnp.sum(partials) / B


# ------------------------- pure-JAX reference -------------------------------
def _reference_loss(logits, tgt_logits, target, rewards, padding_idx,
                    gamma, tau, shaping):
    B, T, V = logits.shape
    lengths = jnp.sum((target != padding_idx).astype(jnp.int32), axis=-1)
    rewards = shaping(rewards).astype(jnp.float32)
    if rewards.ndim == 1:
        rewards = jnp.zeros((B, T), jnp.float32).at[
            jnp.arange(B), lengths - 1].set(rewards)

    logits = logits.astype(jnp.float32)
    tgt_logits = tgt_logits.astype(jnp.float32)
    Q = jnp.take_along_axis(logits, target[..., None], axis=-1)[..., 0]
    Vv = tau * jax.scipy.special.logsumexp(logits / tau, axis=-1)
    V_ = tau * jax.scipy.special.logsumexp(tgt_logits / tau, axis=-1)
    A = Q - Vv

    col = jnp.arange(T)[None, :]
    mask = (col < lengths[:, None]).astype(jnp.float32)
    si = jnp.arange(T)[:, None]
    ti = jnp.arange(T)[None, :]
    M = jnp.where(si >= ti, gamma ** (si - ti).astype(jnp.float32), 0.0)

    A2 = (A * mask) @ M
    R = (rewards * mask) @ M
    m_pcl = (A2 - (R - V_)) ** 2

    V_next = jnp.concatenate([V_[:, 1:], jnp.zeros((B, 1), jnp.float32)], axis=1)
    a_hat = gamma * V_next - V_ + rewards
    a_hat = jnp.where(col == T - 1, 0.0, a_hat)
    a_hat = jnp.where(col == (lengths - 1)[:, None], rewards - V_, a_hat)
    s_pcl = (A - a_hat) ** 2

    raw = 0.5 * (s_pcl + m_pcl)
    return jnp.mean(jnp.sum(raw * mask, axis=1) / lengths.astype(jnp.float32))


if __name__ == "__main__":
    B, T, V = 2, 8, 256
    PAD = 1
    key = jax.random.PRNGKey(0)
    k1, k2, k3, k4 = jax.random.split(key, 4)

    logits = jax.random.normal(k1, (B, T, V), dtype=jnp.float32)
    tgt_logits = jax.random.normal(k2, (B, T, V), dtype=jnp.float32)
    target = jax.random.randint(k3, (B, T), 2, V).astype(jnp.int32)
    # make sequence 1 shorter (length 5) by padding its tail
    target = target.at[1, 5:].set(PAD)
    rewards = jax.random.uniform(k4, (B, T), dtype=jnp.float32)

    crit = SoftQLearningCriterion(
        padding_idx=PAD, label_smoothing=0.0, reward_shaping=True,
        old_r_min=0.0, old_r_max=1.0, new_r_min=-0.5, new_r_max=0.5,
        gamma_pcl=0.95, tau_pcl=0.8)

    sample = {'target': target, 'rewards': rewards}
    loss, logging_output = crit(logits, tgt_logits, sample)
    loss = jax.block_until_ready(loss)

    ref = _reference_loss(logits, tgt_logits, target, rewards, PAD,
                          crit.gamma, crit.tau, crit._reward_shaping_func)
    assert jnp.allclose(loss, ref, rtol=1e-4, atol=1e-5), (loss, ref)
    print("KERNEL_OK")
</pallas_src>

<mosaic_0001>
module attributes {stable_mosaic.version = 11 : i64} {
  func.func @_soft_q_kernel(%arg0: i32, %arg1: i32, %arg2: memref<1x8x256xf32, #tpu.memory_space<vmem>>, %arg3: memref<1x8x256xf32, #tpu.memory_space<vmem>>, %arg4: memref<1x1x8xf32, #tpu.memory_space<vmem>>, %arg5: memref<1x1x8xf32, #tpu.memory_space<vmem>>, %arg6: memref<1x1x1xi32, #tpu.memory_space<vmem>>, %arg7: memref<8x8xf32, #tpu.memory_space<vmem>>, %arg8: memref<1x1x1xf32, #tpu.memory_space<vmem>>, %arg9: memref<1x8xf32, #tpu.memory_space<vmem>>, %arg10: memref<1x8xf32, #tpu.memory_space<vmem>>, %arg11: memref<1x8xf32, #tpu.memory_space<vmem>>, %arg12: memref<1x8xf32, #tpu.memory_space<vmem>>) attributes {dimension_semantics = [#tpu.dimension_semantics<parallel>, #tpu.dimension_semantics<arbitrary>], iteration_bounds = array<i64: 2, 1>, scalar_prefetch = 0 : i64, scratch_operands = 4 : i64, tpu.core_type = #tpu.core_type<tc>, window_params = [{transform_indices = @transform_0, window_bounds = array<i64: 1, 8, 256>}, {transform_indices = @transform_1, window_bounds = array<i64: 1, 8, 256>}, {transform_indices = @transform_2, window_bounds = array<i64: 1, 1, 8>}, {transform_indices = @transform_3, window_bounds = array<i64: 1, 1, 8>}, {transform_indices = @transform_4, window_bounds = array<i64: 1, 1, 1>}, {pipeline_mode = #tpu.pipeline_mode<synchronous>, transform_indices = @transform_5, window_bounds = array<i64: 8, 8>}, {transform_indices = @transform_6, window_bounds = array<i64: 1, 1, 1>}]} {
    %c0_i32 = arith.constant 0 : i32
    %0 = arith.cmpi eq, %arg1, %c0_i32 : i32
    %1 = arith.extui %0 : i1 to i32
    %c0_i32_0 = arith.constant 0 : i32
    %2 = arith.cmpi ne, %1, %c0_i32_0 : i32
    scf.if %2 {
      %cst_33 = arith.constant 0xFF800000 : f32
      %44 = vector.broadcast %cst_33 : f32 to vector<1x8xf32>
      %c0_34 = arith.constant 0 : index
      %c0_35 = arith.constant 0 : index
      %45 = vector.load %arg9[%c0_34, %c0_35] : memref<1x8xf32, #tpu.memory_space<vmem>>, vector<1x8xf32>
      tpu.vector_store %arg9[%c0_34, %c0_35], %44 {strides = array<i32>} : memref<1x8xf32, #tpu.memory_space<vmem>>, vector<1x8xf32>,
      %cst_36 = arith.constant 0.000000e+00 : f32
      %46 = vector.broadcast %cst_36 : f32 to vector<1x8xf32>
      %c0_37 = arith.constant 0 : index
      %c0_38 = arith.constant 0 : index
      %47 = vector.load %arg10[%c0_37, %c0_38] : memref<1x8xf32, #tpu.memory_space<vmem>>, vector<1x8xf32>
      tpu.vector_store %arg10[%c0_37, %c0_38], %46 {strides = array<i32>} : memref<1x8xf32, #tpu.memory_space<vmem>>, vector<1x8xf32>,
      %cst_39 = arith.constant 0xFF800000 : f32
      %48 = vector.broadcast %cst_39 : f32 to vector<1x8xf32>
      %c0_40 = arith.constant 0 : index
      %c0_41 = arith.constant 0 : index
      %49 = vector.load %arg11[%c0_40, %c0_41] : memref<1x8xf32, #tpu.memory_space<vmem>>, vector<1x8xf32>
      tpu.vector_store %arg11[%c0_40, %c0_41], %48 {strides = array<i32>} : memref<1x8xf32, #tpu.memory_space<vmem>>, vector<1x8xf32>,
      %cst_42 = arith.constant 0.000000e+00 : f32
      %50 = vector.broadcast %cst_42 : f32 to vector<1x8xf32>
      %c0_43 = arith.constant 0 : index
      %c0_44 = arith.constant 0 : index
      %51 = vector.load %arg12[%c0_43, %c0_44] : memref<1x8xf32, #tpu.memory_space<vmem>>, vector<1x8xf32>
      tpu.vector_store %arg12[%c0_43, %c0_44], %50 {strides = array<i32>} : memref<1x8xf32, #tpu.memory_space<vmem>>, vector<1x8xf32>,
    } else {
    }
    %c0 = arith.constant 0 : index
    %c0_1 = arith.constant 0 : index
    %c0_2 = arith.constant 0 : index
    %3 = vector.load %arg2[%c0, %c0_1, %c0_2] : memref<1x8x256xf32, #tpu.memory_space<vmem>>, vector<1x8x256xf32>
    %c0_3 = arith.constant 0 : index
    %c0_4 = arith.constant 0 : index
    %c0_5 = arith.constant 0 : index
    %4 = vector.load %arg3[%c0_3, %c0_4, %c0_5] : memref<1x8x256xf32, #tpu.memory_space<vmem>>, vector<1x8x256xf32>
    %cst = arith.constant 1.250000e+00 : f32
    %5 = vector.broadcast %cst : f32 to vector<1x8x256xf32>
    %6 = arith.mulf %3, %5 : vector<1x8x256xf32>
    %cst_6 = arith.constant 1.250000e+00 : f32
    %7 = vector.broadcast %cst_6 : f32 to vector<1x8x256xf32>
    %8 = arith.mulf %4, %7 : vector<1x8x256xf32>
    %cst_7 = arith.constant dense<0xFF800000> : vector<1x8xf32>
    %9 = vector.multi_reduction <maximumf>, %6, %cst_7 [2] : vector<1x8x256xf32> to vector<1x8xf32>
    %c0_8 = arith.constant 0 : index
    %c0_9 = arith.constant 0 : index
    %10 = vector.load %arg9[%c0_8, %c0_9] : memref<1x8xf32, #tpu.memory_space<vmem>>, vector<1x8xf32>
    %11 = arith.maximumf %10, %9 : vector<1x8xf32>
    %c0_10 = arith.constant 0 : index
    %c0_11 = arith.constant 0 : index
    %12 = vector.load %arg9[%c0_10, %c0_11] : memref<1x8xf32, #tpu.memory_space<vmem>>, vector<1x8xf32>
    %13 = arith.subf %12, %11 : vector<1x8xf32>
    %14 = math.exp %13 : vector<1x8xf32>
    %c0_12 = arith.constant 0 : index
    %c0_13 = arith.constant 0 : index
    %15 = vector.load %arg10[%c0_12, %c0_13] : memref<1x8xf32, #tpu.memory_space<vmem>>, vector<1x8xf32>
    %16 = arith.mulf %14, %15 : vector<1x8xf32>
    %17 = vector.shape_cast %11 : vector<1x8xf32> to vector<1x8x1xf32>
    %18 = vector.broadcast %17 : vector<1x8x1xf32> to vector<1x8x256xf32>
    %19 = arith.subf %6, %18 : vector<1x8x256xf32>
    %20 = math.exp %19 : vector<1x8x256xf32>
    %cst_14 = arith.constant dense<0.000000e+00> : vector<1x8xf32>
    %21 = vector.multi_reduction <add>, %20, %cst_14 [2] : vector<1x8x256xf32> to vector<1x8xf32>
    %22 = arith.addf %16, %21 : vector<1x8xf32>
    %c0_15 = arith.constant 0 : index
    %c0_16 = arith.constant 0 : index
    %23 = vector.load %arg10[%c0_15, %c0_16] : memref<1x8xf32, #tpu.memory_space<vmem>>, vector<1x8xf32>
    tpu.vector_store %arg10[%c0_15, %c0_16], %22 {strides = array<i32>} : memref<1x8xf32, #tpu.memory_space<vmem>>, vector<1x8xf32>,
    %c0_17 = arith.constant 0 : index
    %c0_18 = arith.constant 0 : index
    %24 = vector.load %arg9[%c0_17, %c0_18] : memref<1x8xf32, #tpu.memory_space<vmem>>, vector<1x8xf32>
    tpu.vector_store %arg9[%c0_17, %c0_18], %11 {strides = array<i32>} : memref<1x8xf32, #tpu.memory_space<vmem>>, vector<1x8xf32>,
    %cst_19 = arith.constant dense<0xFF800000> : vector<1x8xf32>
    %25 = vector.multi_reduction <maximumf>, %8, %cst_19 [2] : vector<1x8x256xf32> to vector<1x8xf32>
    %c0_20 = arith.constant 0 : index
    %c0_21 = arith.constant 0 : index
    %26 = vector.load %arg11[%c0_20, %c0_21] : memref<1x8xf32, #tpu.memory_space<vmem>>, vector<1x8xf32>
    %27 = arith.maximumf %26, %25 : vector<1x8xf32>
    %c0_22 = arith.constant 0 : index
    %c0_23 = arith.constant 0 : index
    %28 = vector.load %arg11[%c0_22, %c0_23] : memref<1x8xf32, #tpu.memory_space<vmem>>, vector<1x8xf32>
    %29 = arith.subf %28, %27 : vector<1x8xf32>
    %30 = math.exp %29 : vector<1x8xf32>
    %c0_24 = arith.constant 0 : index
    %c0_25 = arith.constant 0 : index
    %31 = vector.load %arg12[%c0_24, %c0_25] : memref<1x8xf32, #tpu.memory_space<vmem>>, vector<1x8xf32>
    %32 = arith.mulf %30, %31 : vector<1x8xf32>
    %33 = vector.shape_cast %27 : vector<1x8xf32> to vector<1x8x1xf32>
    %34 = vector.broadcast %33 : vector<1x8x1xf32> to vector<1x8x256xf32>
    %35 = arith.subf %8, %34 : vector<1x8x256xf32>
    %36 = math.exp %35 : vector<1x8x256xf32>
    %cst_26 = arith.constant dense<0.000000e+00> : vector<1x8xf32>
    %37 = vector.multi_reduction <add>, %36, %cst_26 [2] : vector<1x8x256xf32> to vector<1x8xf32>
    %38 = arith.addf %32, %37 : vector<1x8xf32>
    %c0_27 = arith.constant 0 : index
    %c0_28 = arith.constant 0 : index
    %39 = vector.load %arg12[%c0_27, %c0_28] : memref<1x8xf32, #tpu.memory_space<vmem>>, vector<1x8xf32>
    tpu.vector_store %arg12[%c0_27, %c0_28], %38 {strides = array<i32>} : memref<1x8xf32, #tpu.memory_space<vmem>>, vector<1x8xf32>,
    %c0_29 = arith.constant 0 : index
    %c0_30 = arith.constant 0 : index
    %40 = vector.load %arg11[%c0_29, %c0_30] : memref<1x8xf32, #tpu.memory_space<vmem>>, vector<1x8xf32>
    tpu.vector_store %arg11[%c0_29, %c0_30], %27 {strides = array<i32>} : memref<1x8xf32, #tpu.memory_space<vmem>>, vector<1x8xf32>,
    %c0_i32_31 = arith.constant 0 : i32
    %41 = arith.cmpi eq, %arg1, %c0_i32_31 : i32
    %42 = arith.extui %41 : i1 to i32
    %c0_i32_32 = arith.constant 0 : i32
    %43 = arith.cmpi ne, %42, %c0_i32_32 : i32
    scf.if %43 {
      %c0_33 = arith.constant 0 : index
      %c0_34 = arith.constant 0 : index
      %44 = vector.load %arg9[%c0_33, %c0_34] : memref<1x8xf32, #tpu.memory_space<vmem>>, vector<1x8xf32>
      %c0_35 = arith.constant 0 : index
      %c0_36 = arith.constant 0 : index
      %45 = vector.load %arg10[%c0_35, %c0_36] : memref<1x8xf32, #tpu.memory_space<vmem>>, vector<1x8xf32>
      %46 = math.log %45 : vector<1x8xf32>
      %47 = arith.addf %44, %46 : vector<1x8xf32>
      %c0_37 = arith.constant 0 : index
      %c0_38 = arith.constant 0 : index
      %48 = vector.load %arg11[%c0_37, %c0_38] : memref<1x8xf32, #tpu.memory_space<vmem>>, vector<1x8xf32>
      %c0_39 = arith.constant 0 : index
      %c0_40 = arith.constant 0 : index
      %49 = vector.load %arg12[%c0_39, %c0_40] : memref<1x8xf32, #tpu.memory_space<vmem>>, vector<1x8xf32>
      %50 = math.log %49 : vector<1x8xf32>
      %51 = arith.addf %48, %50 : vector<1x8xf32>
      %cst_41 = arith.constant 8.000000e-01 : f32
      %52 = vector.broadcast %cst_41 : f32 to vector<1x8xf32>
      %53 = arith.mulf %47, %52 : vector<1x8xf32>
      %cst_42 = arith.constant 8.000000e-01 : f32
      %54 = vector.broadcast %cst_42 : f32 to vector<1x8xf32>
      %55 = arith.mulf %51, %54 : vector<1x8xf32>
      %c0_43 = arith.constant 0 : index
      %c0_44 = arith.constant 0 : index
      %c0_45 = arith.constant 0 : index
      %56 = vector.load %arg4[%c0_43, %c0_44, %c0_45] : memref<1x1x8xf32, #tpu.memory_space<vmem>>, vector<1x1x8xf32>
      %57 = vector.shape_cast %56 : vector<1x1x8xf32> to vector<1x8xf32>
      %c0_46 = arith.constant 0 : index
      %c0_47 = arith.constant 0 : index
      %c0_48 = arith.constant 0 : index
      %58 = vector.load %arg5[%c0_46, %c0_47, %c0_48] : memref<1x1x8xf32, #tpu.memory_space<vmem>>, vector<1x1x8xf32>
      %59 = vector.shape_cast %58 : vector<1x1x8xf32> to vector<1x8xf32>
      %c0_49 = arith.constant 0 : index
      %c0_50 = arith.constant 0 : index
      %c0_51 = arith.constant 0 : index
      %60 = vector.load %arg6[%c0_49, %c0_50, %c0_51] : memref<1x1x1xi32, #tpu.memory_space<vmem>>, vector<1x1x1xi32>
      %61 = vector.shape_cast %60 : vector<1x1x1xi32> to vector<1x1xi32>
      %62 = arith.subf %57, %53 : vector<1x8xf32>
      %63 = tpu.iota {dimensions = array<i32: 1>} : vector<1x8xi32>
      %64 = vector.broadcast %61 : vector<1x1xi32> to vector<1x8xi32>
      %65 = arith.cmpi slt, %63, %64 : vector<1x8xi32>
      %66 = arith.extui %65 : vector<1x8xi1> to vector<1x8xi32>
      %67 = arith.sitofp %66 : vector<1x8xi32> to vector<1x8xf32>
      %68 = tpu.iota {dimensions = array<i32: 0>} : vector<8x8xi32>
      %69 = tpu.iota {dimensions = array<i32: 1>} : vector<8x8xi32>
      %c1_i32 = arith.constant 1 : i32
      %70 = vector.broadcast %c1_i32 : i32 to vector<8x8xi32>
      %71 = arith.addi %69, %70 : vector<8x8xi32>
      %72 = arith.cmpi eq, %68, %71 : vector<8x8xi32>
      %73 = arith.extui %72 : vector<8x8xi1> to vector<8x8xi32>
      %74 = arith.sitofp %73 : vector<8x8xi32> to vector<8x8xf32>
      %cst_52 = arith.constant dense<0.000000e+00> : vector<1x8xf32>
      %75 = tpu.matmul %55, %74, %cst_52 {dimension_numbers = #tpu.dot_dimension_numbers<[1], [0], [0], [1], [0, 0, 1, 1], [], []>} : vector<1x8xf32>, vector<8x8xf32>, vector<1x8xf32> -> vector<1x8xf32>
      %c1_i32_53 = arith.constant 1 : i32
      %76 = vector.broadcast %c1_i32_53 : i32 to vector<1x1xi32>
      %77 = arith.subi %61, %76 : vector<1x1xi32>
      %78 = vector.broadcast %77 : vector<1x1xi32> to vector<1x8xi32>
      %79 = arith.cmpi eq, %63, %78 : vector<1x8xi32>
      %80 = arith.subf %59, %55 : vector<1x8xf32>
      %cst_54 = arith.constant 0.949999988 : f32
      %81 = vector.broadcast %cst_54 : f32 to vector<1x8xf32>
      %82 = arith.mulf %81, %75 : vector<1x8xf32>
      %83 = arith.subf %82, %55 : vector<1x8xf32>
      %84 = arith.addf %83, %59 : vector<1x8xf32>
      %85 = arith.select %79, %80, %84 : vector<1x8xi1>, vector<1x8xf32>
      %86 = arith.subf %62, %85 : vector<1x8xf32>
      %87 = arith.mulf %86, %86 : vector<1x8xf32>
      %c0_55 = arith.constant 0 : index
      %c0_56 = arith.constant 0 : index
      %88 = vector.load %arg7[%c0_55, %c0_56] : memref<8x8xf32, #tpu.memory_space<vmem>>, vector<8x8xf32>
      %89 = arith.subf %62, %59 : vector<1x8xf32>
      %90 = arith.mulf %89, %67 : vector<1x8xf32>
      %cst_57 = arith.constant dense<0.000000e+00> : vector<1x8xf32>
      %91 = tpu.matmul %90, %88, %cst_57 {dimension_numbers = #tpu.dot_dimension_numbers<[1], [0], [0], [1], [0, 0, 1, 1], [], []>} : vector<1x8xf32>, vector<8x8xf32>, vector<1x8xf32> -> vector<1x8xf32>
      %92 = arith.addf %91, %55 : vector<1x8xf32>
      %93 = arith.mulf %92, %92 : vector<1x8xf32>
      %94 = arith.addf %87, %93 : vector<1x8xf32>
      %cst_58 = arith.constant 5.000000e-01 : f32
      %95 = vector.broadcast %cst_58 : f32 to vector<1x8xf32>
      %96 = arith.mulf %95, %94 : vector<1x8xf32>
      %c1_i32_59 = arith.constant 1 : i32
      %97 = vector.broadcast %c1_i32_59 : i32 to vector<1x1xi32>
      %98 = arith.maxsi %61, %97 : vector<1x1xi32>
      %99 = arith.sitofp %98 : vector<1x1xi32> to vector<1x1xf32>
      %100 = arith.mulf %96, %67 : vector<1x8xf32>
      %101 = tpu.reciprocal %99 : vector<1x1xf32> -> vector<1x1xf32>
      %102 = vector.broadcast %101 : vector<1x1xf32> to vector<1x8xf32>
      %103 = arith.mulf %100, %102 : vector<1x8xf32>
      %104 = vector.shape_cast %103 : vector<1x8xf32> to vector<1x1x8xf32>
      %cst_60 = arith.constant dense<0.000000e+00> : vector<1xf32>
      %105 = vector.multi_reduction <add>, %104, %cst_60 [1, 2] : vector<1x1x8xf32> to vector<1xf32>
      %106 = vector.shape_cast %105 : vector<1xf32> to vector<1x1x1xf32>
      %107 = vector.extract %106[0, 0, 0] : f32 from vector<1x1x1xf32>
      %108 = vector.broadcast %107 : f32 to vector<1x1x1xf32>
      %c0_61 = arith.constant 0 : index
      %c0_62 = arith.constant 0 : index
      %c0_63 = arith.constant 0 : index
      %109 = vector.load %arg8[%c0_61, %c0_62, %c0_63] : memref<1x1x1xf32, #tpu.memory_space<vmem>>, vector<1x1x1xf32>
      tpu.vector_store %arg8[%c0_61, %c0_62, %c0_63], %108 {strides = array<i32>} : memref<1x1x1xf32, #tpu.memory_space<vmem>>, vector<1x1x1xf32>,
    } else {
    }
    return
  }
  func.func @transform_0(%arg0: i32, %arg1: i32) -> (i32, i32, i32) {
    %c0_i32 = arith.constant 0 : i32
    %c0_i32_0 = arith.constant 0 : i32
    return %arg0, %c0_i32, %arg1 : i32, i32, i32
  }
  func.func @transform_1(%arg0: i32, %arg1: i32) -> (i32, i32, i32) {
    %c0_i32 = arith.constant 0 : i32
    %c0_i32_0 = arith.constant 0 : i32
    return %arg0, %c0_i32, %arg1 : i32, i32, i32
  }
  func.func @transform_2(%arg0: i32, %arg1: i32) -> (i32, i32, i32) {
    %c0_i32 = arith.constant 0 : i32
    %c0_i32_0 = arith.constant 0 : i32
    %c0_i32_1 = arith.constant 0 : i32
    return %arg0, %c0_i32, %c0_i32_0 : i32, i32, i32
  }
  func.func @transform_3(%arg0: i32, %arg1: i32) -> (i32, i32, i32) {
    %c0_i32 = arith.constant 0 : i32
    %c0_i32_0 = arith.constant 0 : i32
    %c0_i32_1 = arith.constant 0 : i32
    return %arg0, %c0_i32, %c0_i32_0 : i32, i32, i32
  }
  func.func @transform_4(%arg0: i32, %arg1: i32) -> (i32, i32, i32) {
    %c0_i32 = arith.constant 0 : i32
    %c0_i32_0 = arith.constant 0 : i32
    %c0_i32_1 = arith.constant 0 : i32
    return %arg0, %c0_i32, %c0_i32_0 : i32, i32, i32
  }
  func.func @transform_5(%arg0: i32, %arg1: i32) -> (i32, i32) {
    %c0_i32 = arith.constant 0 : i32
    %c0_i32_0 = arith.constant 0 : i32
    %c0_i32_1 = arith.constant 0 : i32
    return %c0_i32, %c0_i32_0 : i32, i32
  }
  func.func @transform_6(%arg0: i32, %arg1: i32) -> (i32, i32, i32) {
    %c0_i32 = arith.constant 0 : i32
    %c0_i32_0 = arith.constant 0 : i32
    %c0_i32_1 = arith.constant 0 : i32
    return %arg0, %c0_i32, %c0_i32_0 : i32, i32, i32
  }
}

</mosaic_0001>

<bundles_post_ra>
// kernel: tpu_custom_call.1
= control target key start
LH: loop header
LB: loop body
LE: loop exit
PB: predicated region body
PF: predicated region fallthrough
CT: control target
= control target key end

     0   :  { %11 = vsyncpa [#allocation7], 0  ;;  %s1863_s0 = inlined_call_operand.hbm [shape: f32[2,8,256], index: 0, kind: input, shape index: {}]   ;;  %s1864_s1 = inlined_call_operand.hbm [shape: f32[2,8,256], index: 1, kind: input, shape index: {}]   ;;  %s1865_s2 = inlined_call_operand.vmem [shape: f32[2,1,8], index: 2, kind: input, shape index: {}]   ;;  %s1866_s3 = inlined_call_operand.vmem [shape: f32[2,1,8], index: 3, kind: input, shape index: {}]   ;;  %s1867_s4 = inlined_call_operand.vmem [shape: s32[2,1,1], index: 4, kind: input, shape index: {}]   ;;  %s1868_s5 = inlined_call_operand.vmem [shape: f32[8,8], index: 5, kind: input, shape index: {}]   ;;  %s1869_s6 = inlined_call_operand.vmem [shape: f32[2,1,1], index: 6, kind: output, shape index: {}]  }
   0x1   :  { %13 = vsyncpa [#allocation7 + $0x1], 0 }
   0x2   :  { %14 = vsyncpa [#allocation9], 0 }
   0x3   :  { %16 = vsyncpa [#allocation9 + $0x1], 0  ;;  %s1501_s21 = smov 0   ;;  %s1503_s22 = smov 0  }
   0x4   :  { %s1505_s23 = smov 0   ;;  %s1507_s24 = smov 0  }
   0x5   :  { %s1509_s25 = smov 0   ;;  %s1511_s26 = smov 0  }
   0x6 LB: > { %s1217_s27 = sadd.s32 4294967295, %s1456_s26   ;;  %s34_s28 = sadd.s32 1, %s1452_s25  ;;  %s1456_s26 = sphi %s1511_s26, %s22_s26   ;;  %s1452_s25 = sphi %s1509_s25, %s1883_s25   ;;  %s1448_s24 = sphi %s1507_s24, %s1882_s24   ;;  %s1444_s23 = sphi %s1505_s23, %s1881_s23   ;;  %s1440_s22 = sphi %s1503_s22, %s1880_s22   ;;  %s1436_s21 = sphi %s1501_s21, %s1879_s21  }
   0x7   : > { %p36_p0 = scmp.ge.s32.totalorder %s34_s28, 2  ;;  %s43_s29 = sadd.s32 1, %s1444_s23 }
   0x8   : > { %p50_p1 = scmp.ne.s32.totalorder %s1444_s23, %s1440_s22  ;;  %p51_p2 = scmp.eq.s32.totalorder %s1456_s26, 0 }
   0x9   : > { %s1885_s28 = smov (%p36_p0, %s34_s28), 0  ;;  %p56_p4 = scmp.ne.s32.totalorder %s1440_s22, %s1436_s21 }
   0xa   : > { %p1537_p3 = por %p51_p2, %p50_p1  ;;  %s38_s7 = ssub.s32 %s1452_s25, %s1885_s28 }
   0xb   : > { %p57_p5 = scmp.eq.s32.totalorder %s1217_s27, 0  ;;  %p41_p6 = scmp.eq.s32.totalorder %s38_s7, 0 }
   0xc   : > { %p1267_p8 = scmp.lt.s32.totalorder %s1456_s26, 2  ;;  %s1553_s10 = sand.u32 1, %s1444_s23  }
   0xd   : > { %p1544_p7 = por %p57_p5, %p56_p4  ;;  %s1238_s11 = sshll.u32 %s1452_s25, 8 }
   0xe   : > { %s1550_s9 = scalar_select %p41_p6, %s1444_s23, %s43_s29  }
   0xf   : > { %s1872_s8 = scalar_select %p1544_p7, 1, 0 }
  0x10   : > { %s1221_s12 = sshll.u32 %s1553_s10, 4  ;;  %s1562_s15 = scalar_lea.hbm %s1863_s0, %s1238_s11 }
  0x11   : > { %s240_s16 = scalar_lea.vmem [#allocation6], %s1221_s12  ;;  %p1568_p9 = pnand %p1267_p8, %p1537_p3 }
  0x12   : > { %s250_s17 = sshll.u32 %s240_s16, 4  ;;  %s237_s19 = scalar_lea.sflag [#allocation7], %s1553_s10  ;;  %s1572_s17 = int_to_ptr.vmem [resolvable:$true] %s250_s17 }
  0x13   : > { %s1342_s20 = scalar_lea.hbm %s1562_s15, 256  ;;  %p1344_p13 = pneg %p1568_p9 }
  0x14   : > { %p1343_p12 = scmp.ne.s32.totalorder %s1562_s15, %s1342_s20  ;;  %s1347_s29 = scalar_lea.hbm %s1863_s0, 512 }
  0x15   : > { %p1348_p2 = scmp.lt.u32.totalorder %s1562_s15, %s1863_s0  ;;  %p1349_p3 = scmp.lt.u32.totalorder %s1347_s29, %s1342_s20 }
  0x16   : > { %p1345_p0 = pnand %p1344_p13, %p1343_p12  ;;  %p1351_p5 = scmp.lt.u32.totalorder %s1342_s20, %s1562_s15 }
  0x17   : > { %p1350_p4 = por %p1349_p3, %p1348_p2 }
  0x18   : > { %p1346_p1 = pneg %p1345_p0 }
  0x19   : > { %p1352_p6 = por %p1351_p5, %p1350_p4 }
  0x1b   : > { %p1353_p8 = pnand %p1352_p6, %p1346_p1 }
  0x1d   : > { %1356 = shalt.err (!%p1353_p8)
}
  0x1e   : > { %s1357_s13 = scalar_lea.vmem %s1572_s17, 256  ;;  %s1458_s14 = smov [#allocation6]  }
  0x1f   : > { %p1358_p12 = scmp.ne.s32.totalorder %s1572_s17, %s1357_s13  ;;  %s1362_s16 = sshll.u32 %s1458_s14, 4  ;;  %s1363_s16 = int_to_ptr.vmem [resolvable:$false] %s1362_s16 }
  0x20   : > { %s1364_s21 = scalar_lea.vmem %s1363_s16, 512  ;;  %p1365_p11 = scmp.lt.s32.totalorder %s1572_s17, %s1363_s16 }
  0x21   : > { %p1360_p0 = pnand %p1358_p12, %p1344_p13  ;;  %p1366_p2 = scmp.lt.s32.totalorder %s1364_s21, %s1357_s13 }
  0x23   : > { %p1361_p10 = pneg %p1360_p0  ;;  %p1367_p3 = por %p1366_p2, %p1365_p11 }
  0x25   : > { %p1368_p4 = pnand %p1367_p3, %p1361_p10 }
  0x27   : > { %1371 = shalt.err (!%p1368_p4)
}
  0x28   : > { %1263 = dma.hbm_to_vmem [thread:$0]  (!%p1568_p9), %s1562_s15, 256, %s1572_s17, %s237_s19  }
  0x29   : > { %p1874_p1 = scmp.lt.s32.totalorder %s1456_s26, 3  ;;  %p1875_p5 = scmp.ge.s32.totalorder %s1456_s26, 1 }
  0x2a   : > { %s1615_s30 = scalar_lea.hbm %s1864_s1, %s1238_s11  ;;  %s261_s7 = scalar_lea.vmem [#allocation8], %s1221_s12 }
  0x2b   : > { %p1606_p6 = pnand %p1875_p5, %p1874_p1  ;;  %s271_s13 = sshll.u32 %s261_s7, 4  ;;  %s272_s13 = int_to_ptr.vmem [resolvable:$true] %s271_s13 }
  0x2c   : > { %s258_s15 = scalar_lea.sflag [#allocation9], %s1553_s10  ;;  %s1372_s17 = scalar_lea.hbm %s1615_s30, 256 }
  0x2d   : > { %s1876_s20 = scalar_select %p1606_p6, 1, 0 }
  0x2e   : > { %p1373_p10 = scmp.ne.s32.totalorder %s1615_s30, %s1372_s17  ;;  %s1377_s11 = scalar_lea.hbm %s1864_s1, 512 }
  0x2f   : > { %p1378_p12 = scmp.lt.u32.totalorder %s1615_s30, %s1864_s1  ;;  %p1379_p0 = scmp.lt.u32.totalorder %s1377_s11, %s1372_s17 }
  0x30   : > { %p1375_p11 = pnand %p1373_p10, %p1344_p13  ;;  %p1381_p3 = scmp.lt.u32.totalorder %s1372_s17, %s1615_s30 }
  0x31   : > { %p1380_p2 = por %p1379_p0, %p1378_p12 }
  0x32   : > { %p1376_p8 = pneg %p1375_p11 }
  0x33   : > { %p1382_p4 = por %p1381_p3, %p1380_p2 }
  0x35   : > { %p1383_p1 = pnand %p1382_p4, %p1376_p8 }
  0x37   : > { %1386 = shalt.err (!%p1383_p1)
}
  0x38   : > { %s1387_s10 = scalar_lea.vmem %s272_s13, 256  ;;  %s1459_s12 = smov [#allocation8]  }
  0x39   : > { %p1388_p5 = scmp.ne.s32.totalorder %s272_s13, %s1387_s10  ;;  %s1392_s27 = sshll.u32 %s1459_s12, 4  ;;  %s1393_s27 = int_to_ptr.vmem [resolvable:$false] %s1392_s27 }
  0x3a   : > { %s1394_s29 = scalar_lea.vmem %s1393_s27, 512  ;;  %p1395_p7 = scmp.lt.s32.totalorder %s272_s13, %s1393_s27 }
  0x3b   : > { %p1390_p10 = pnand %p1388_p5, %p1344_p13  ;;  %p1396_p6 = scmp.lt.s32.totalorder %s1394_s29, %s1387_s10 }
  0x3d   : > { %p1391_p11 = pneg %p1390_p10  ;;  %p1397_p0 = por %p1396_p6, %p1395_p7 }
  0x3f   : > { %p1398_p12 = pnand %p1397_p0, %p1391_p11 }
  0x41   : > { %1401 = shalt.err (!%p1398_p12)
}
  0x42   : > { %1266 = dma.hbm_to_vmem [thread:$0]  (!%p1568_p9), %s1615_s30, 256, %s272_s13, %s258_s15  }
  0x43   : > { %p1877_p8 = scmp.ne.s32.totalorder %s1876_s20, 0 }
  0x44   : > { %s300_s7 = sand.u32 (!%p1877_p8), 1, %s1440_s22   ;;  %p1878_p13 = scmp.ne.s32.totalorder (!%p1877_p8), %s1872_s8, 0 }
  0x45   : > { %298 = sbr.rel (%p1877_p8) target bundleno = 1270 (0x4f6), region = 44  ;;  %s1228_s17 = sshll.u32 (!%p1877_p8), %s300_s7, 4 }
  0x46   : > { %s301_s19 = scalar_lea.sflag (!%p1877_p8), [#allocation7], %s300_s7  ;;  %s304_s14 = scalar_lea.vmem (!%p1877_p8), [#allocation6], %s1228_s17 }
  0x4c   : > { %1427 = dma.done.wait (%p1878_p13), %s301_s19, 256  }
  0x4d   : > { %1429 = vsyncadd (%p1878_p13), %s301_s19, 4294967040  ;;  %s310_s11 = scalar_lea.sflag [#allocation9], %s300_s7  ;;  %s313_s16 = scalar_lea.vmem [#allocation8], %s1228_s17 }
  0x4e   : > { %1431 = dma.done.wait (%p1878_p13), %s310_s11, 256  }
  0x4f   : > { %1433 = vsyncadd (%p1878_p13), %s310_s11, 4294967040  ;;  %v379_v0 = vld [vmem:[%s313_s16] sm:$0xff]  ;;  %v380_v1 = vld [vmem:[%s313_s16 + $0x8] sm:$0xff]  ;;  %v1460_v10 = vmov 0   ;;  %v390_v11 = vlaneseq  ;;  %v1461_v12 = vmov 1966171168  }
  0x50   : > { %v377_v2 = vld [vmem:[%s304_s14] sm:$0xff]  ;;  %v1650_v3 = vmul.f32 1.25, %v379_v0  ;;  %v1652_v4 = vmul.f32 1.25, %v380_v1  ;;  %v378_v5 = vld [vmem:[%s304_s14 + $0x8] sm:$0xff]  ;;  %1322 = vset.pattern.permute.xlu1 %v1460_v10  ;;  %1323 = vset.pattern.permute.xlu0 %v1460_v10  ;;  %v427_v13 = vunpack.c.l.s4 %v1461_v12  ;;  %vm372_vm0 = vcmask 57344   ;;  %p356_p7 = scmp.lt.s32.totalorder %s1448_s24, 1 }
  0x51   : > { %v1654_v6 = vmul.f32 1.25, %v377_v2  ;;  %v1656_v7 = vmul.f32 1.25, %v378_v5  ;;  %v1663_v14 = vshrl.u32 %v390_v11, 7  ;;  %v1462_v5 = vmov -inf  }
  0x52   : > { %v625_v8 = vmax.f32 %v1650_v3, %v1652_v4  ;;  %v428_v15 = vunpack.c.0.s8 %v427_v13  ;;  %375 = vst.msk [vmem:[#allocation4] sm:$0x1] %vm372_vm0, %v1462_v5  ;;  %373 = vst.msk [vmem:[#allocation2] sm:$0x1] %vm372_vm0, %v1462_v5  ;;  %v1463_v10 = vmov 0.0   ;;  %v1729_v12 = vand.u32 127, %v390_v11 }
  0x53   : > { %v385_v9 = vmax.f32 %v1654_v6, %v1656_v7  ;;  %v1666_v16 = vsub.s32 0, %v1663_v14  ;;  %v1669_v17 = vsub.s32 1, %v1663_v14  ;;  %v1672_v18 = vsub.s32 2, %v1663_v14  ;;  %376 = vst.msk [vmem:[#allocation5] sm:$0x1] %vm372_vm0, %v1463_v10  ;;  %1244 = vmatprep.subr.mxu0 %v1463_v10  ;;  %1249 = vmatprep.subr.mxu1 %v1463_v10  ;;  %s1887_s24 = smov (!%p356_p7, %s1448_s24), 1 }
  0x54   : > { %626 = vmax.xlane.f32.xlu0 %v625_v8  ;;  %v1675_v19 = vsub.s32 3, %v1663_v14  ;;  %v1678_v20 = vsub.s32 4, %v1663_v14  ;;  %v1681_v21 = vsub.s32 5, %v1663_v14  ;;  %v1684_v22 = vsub.s32 6, %v1663_v14  ;;  %374 = vst.msk [vmem:[#allocation3] sm:$0x1] %vm372_vm0, %v1463_v10  ;;  %s364_s20 = scalar_lea.vmem %s1867_s4, %s1887_s24  ;;  %s358_s10 = scalar_lea.vmem %s1865_s2, %s1887_s24 }
  0x55   : > { %v1687_v23 = vsub.s32 7, %v1663_v14  ;;  %v1690_v25 = vsub.s32 %v428_v15, %v1663_v14  ;;  %v1733_v13 = vsub.s32 %v1729_v12, %v1663_v14  ;;  %vm1465_vm3 = vmmov 0   ;;  %s361_s29 = scalar_lea.vmem %s1866_s3, %s1887_s24  ;;  %s367_s19 = scalar_lea.vmem %s1869_s6, %s1887_s24 }
  0x56   : > { %1246 = vmatprep.mubr.msk.f32.mxu0 %vm1465_vm3, %v1463_v10  ;;  %1251 = vmatprep.mubr.msk.f32.mxu1 %vm1465_vm3, %v1463_v10  ;;  %vm897_vm4 = vcmask 64512   ;;  %vm1092_vm7 = vcmask 0  }
  0x58   : > { %386 = vmax.xlane.f32.xlu0 %v385_v9 }
  0xe1   : > { %v627_v24 = vpop.xlane.xlu0 %626 }
  0xe2   : > { %v633_v26 = vrot.slane %v627_v24, %v1666_v16  ;;  %v637_v27 = vrot.slane %v627_v24, %v1669_v17  ;;  %v641_v28 = vrot.slane %v627_v24, %v1672_v18  ;;  %v645_v29 = vrot.slane %v627_v24, %v1675_v19 }
  0xe3   : > { %v649_v30 = vrot.slane %v627_v24, %v1678_v20  ;;  %v653_v31 = vrot.slane %v627_v24, %v1681_v21  ;;  %v657_v32 = vrot.slane %v627_v24, %v1684_v22  ;;  %v661_v33 = vrot.slane %v627_v24, %v1687_v23 }
  0xe4   : > { %v662_v34 = vcombine.low %v633_v26, %v637_v27  ;;  %v663_v35 = vcombine.low %v641_v28, %v645_v29  ;;  %v1737_v27 = vld [vmem:[#allocation4] sm:$0x1] }
  0xe5   : > { %v387_v36 = vpop.xlane.xlu0 %386  ;;  %v664_v37 = vcombine.low %v649_v30, %v653_v31  ;;  %v665_v38 = vcombine.low %v657_v32, %v661_v33 }
  0xe6   : > { %v672_v39 = vrot.slane %v662_v34, %v1690_v25  ;;  %v679_v40 = vrot.slane %v663_v35, %v1690_v25  ;;  %v393_v41 = vrot.slane %v387_v36, %v1666_v16  ;;  %v397_v42 = vrot.slane %v387_v36, %v1669_v17  ;;  %v1751_v34 = vld [vmem:[#allocation2] sm:$0x1] }
  0xe7   : > { %v686_v43 = vrot.slane %v664_v37, %v1690_v25  ;;  %v693_v44 = vrot.slane %v665_v38, %v1690_v25  ;;  %v401_v45 = vrot.slane %v387_v36, %v1672_v18  ;;  %v405_v46 = vrot.slane %v387_v36, %v1675_v19 }
  0xe8   : > { %v694_v47 = vcombine.low %v672_v39, %v679_v40  ;;  %v409_v48 = vrot.slane %v387_v36, %v1678_v20  ;;  %v413_v49 = vrot.slane %v387_v36, %v1681_v21  ;;  %v417_v50 = vrot.slane %v387_v36, %v1684_v22 }
  0xe9   : > { %v695_v51 = vcombine.low %v686_v43, %v693_v44  ;;  %v421_v52 = vrot.slane %v387_v36, %v1687_v23  ;;  %v422_v53 = vcombine.low %v393_v41, %v397_v42  ;;  %v423_v54 = vcombine.low %v401_v45, %v405_v46 }
  0xea   : > { %v702_v55 = vrot.slane %v694_v47, %v1690_v25  ;;  %v424_v56 = vcombine.low %v409_v48, %v413_v49 }
  0xeb   : > { %v709_v57 = vrot.slane %v695_v51, %v1690_v25  ;;  %v425_v58 = vcombine.low %v417_v50, %v421_v52  ;;  %v432_v59 = vrot.slane %v422_v53, %v1690_v25  ;;  %v439_v60 = vrot.slane %v423_v54, %v1690_v25 }
  0xec   : > { %v446_v61 = vrot.slane %v424_v56, %v1690_v25 }
  0xed   : > { %v710_v62 = vcombine.low %v702_v55, %v709_v57  ;;  %v453_v63 = vrot.slane %v425_v58, %v1690_v25  ;;  %v454_v0 = vcombine.low %v432_v59, %v439_v60 }
  0xef   : > { %712 = vperm.xlu1 %1322, %v710_v62   ;;  %v455_v1 = vcombine.low %v446_v61, %v453_v63  ;;  %v462_v2 = vrot.slane %v454_v0, %v1690_v25 }
  0xf1   : > { %v469_v8 = vrot.slane %v455_v1, %v1690_v25 }
  0xf3   : > { %v470_v9 = vcombine.low %v462_v2, %v469_v8 }
  0xf5   : > { %472 = vperm.xlu1 %1322, %v470_v9  }
 0x16e   : > { %v713_v15 = vpop.permute.xlu1 %712 }
 0x16f   : > { %v717_v24 = vrot.slane %v713_v15, %v1733_v13 }
 0x171   : > { %v724_v26 = vrot.slane %v717_v24, %v1690_v25 }
 0x173   : > { %v731_v28 = vrot.slane %v724_v26, %v1690_v25 }
 0x174   : > { %v473_v29 = vpop.permute.xlu1 %472 }
 0x175   : > { %v479_v30 = vrot.slane %v473_v29, %v1733_v13  ;;  %v1742_v31 = vmax.f32 %v1737_v27, %v731_v28 }
 0x177   : > { %v486_v11 = vrot.slane %v479_v30, %v1690_v25  ;;  %v742_v32 = vrot.slane %v1742_v31, %v1666_v16  ;;  %861 = vst.msk [vmem:[#allocation4] sm:$0x1] %vm372_vm0, %v1742_v31  ;;  %v734_v33 = vsub.f32 %v1737_v27, %v1742_v31 }
 0x179   : > { %v493_v35 = vrot.slane %v486_v11, %v1690_v25  ;;  %744 = vbcast.lane.b32.xlu0 %v742_v32, 256 }
 0x17b   : > { %v1755_v36 = vmax.f32 %v1751_v34, %v493_v35 }
 0x17d   : > { %v504_v37 = vrot.slane %v1755_v36, %v1666_v16  ;;  %624 = vst.msk [vmem:[#allocation2] sm:$0x1] %vm372_vm0, %v1755_v36  ;;  %v496_v38 = vsub.f32 %v1751_v34, %v1755_v36 }
 0x17f   : > { %506 = vbcast.lane.b32.xlu1 %v504_v37, 256 }
 0x1eb   : > { %v745_v39 = vpop.permute.xlu0 %744 }
 0x1ec   : > { %v746_v40 = vsub.f32 %v1650_v3, %v745_v39  ;;  %v747_v41 = vsub.f32 %v1652_v4, %v745_v39 }
 0x1ee   : > { %v748_v42 = vmul.f32 1.442695, %v746_v40  ;;  %v750_v43 = vmul.f32 1.442695, %v747_v41 }
 0x1f0   : > { %1324 = vpow2.f32 %v748_v42 }
 0x1f1   : > { %1326 = vpow2.f32 %v750_v43  ;;  %v507_v44 = vpop.permute.xlu1 %506 }
 0x1f2   : > { %v508_v45 = vsub.f32 %v1654_v6, %v507_v44  ;;  %v509_v46 = vsub.f32 %v1656_v7, %v507_v44  ;;  %v879_v6 = vld [vmem:[%s364_s20] sm:$0x1] }
 0x1f3   : > { %vm1066_vm1 = vcmp.gt.s32.totalorder %v879_v6, 1 }
 0x1f4   : > { %v510_v47 = vmul.f32 1.442695, %v508_v45  ;;  %v512_v48 = vmul.f32 1.442695, %v509_v46  ;;  %v1067_v63 = vsel %vm1066_vm1, %v879_v6, 1 }
 0x1f5   : > { %v1068_v24 = vcvt.s32.f32 %v1067_v63 }
 0x1f6   : > { %1328 = vpow2.f32 %v510_v47 }
 0x1f7   : > { %1330 = vpow2.f32 %v512_v48 }
 0x1f8   : > { %1332 = vrcp.f32 %v1068_v24 }
 0x1fa   : > { %v1325_v49 = vpop.eup %1324 }
 0x1fb   : > { %v1327_v50 = vpop.eup %1326 }
 0x1fc   : > { %v752_v3 = vadd.f32 %v1327_v50, %v1325_v49  ;;  %v1234_v49 = vadd.s32 4294967295, %v879_v6 }
 0x1fe   : > { %753 = vadd.xlane.f32.xlu1 %v752_v3 }
 0x200   : > { %v1329_v4 = vpop.eup %1328 }
 0x201   : > { %v1331_v51 = vpop.eup %1330 }
 0x202   : > { %v514_v52 = vadd.f32 %v1331_v51, %v1329_v4  ;;  %v1333_v3 = vpop.eup %1332  ;;  %v893_v4 = vadd.s32 1, %v1729_v12  ;;  %v1464_v51 = vmov 1.0  }
 0x204   : > { %515 = vadd.xlane.f32.xlu0 %v514_v52  ;;  %vm894_vm2 = vcmp.eq.s32.totalorder %v1663_v14, %v893_v4  ;;  %v987_v52 = vld [vmem:[%s1868_s5] sm:$0xff]  ;;  %v497_v14 = vmul.f32 1.442695, %v496_v38 }
 0x205   : > { %1245 = vmatpush3.msk.msra.mxu0 %vm894_vm2, %v1464_v51  ;;  %1250 = vmatpush3.msra.mxu1 %v987_v52 }
 0x28b   : > { %v754_v7 = vpop.xlane.xlu1 %753 }
 0x28c   : > { %v759_v53 = vrot.slane %v754_v7, %v1666_v16  ;;  %v763_v54 = vrot.slane %v754_v7, %v1669_v17  ;;  %v767_v55 = vrot.slane %v754_v7, %v1672_v18  ;;  %v771_v56 = vrot.slane %v754_v7, %v1675_v19 }
 0x28d   : > { %v775_v57 = vrot.slane %v754_v7, %v1678_v20  ;;  %v779_v58 = vrot.slane %v754_v7, %v1681_v21  ;;  %v783_v59 = vrot.slane %v754_v7, %v1684_v22  ;;  %v787_v60 = vrot.slane %v754_v7, %v1687_v23 }
 0x28e   : > { %v788_v61 = vcombine.low %v759_v53, %v763_v54  ;;  %v789_v62 = vcombine.low %v767_v55, %v771_v56  ;;  %v737_v55 = vld [vmem:[#allocation5] sm:$0x1] }
 0x28f   : > { %v790_v0 = vcombine.low %v775_v57, %v779_v58  ;;  %v791_v1 = vcombine.low %v783_v59, %v787_v60 }
 0x290   : > { %v798_v2 = vrot.slane %v788_v61, %v1690_v25  ;;  %v805_v5 = vrot.slane %v789_v62, %v1690_v25 }
 0x291   : > { %v516_v8 = vpop.xlane.xlu0 %515  ;;  %v812_v9 = vrot.slane %v790_v0, %v1690_v25  ;;  %v819_v15 = vrot.slane %v791_v1, %v1690_v25  ;;  %v870_v1 = vld [vmem:[#allocation4] sm:$0x1] }
 0x292   : > { %v820_v26 = vcombine.low %v798_v2, %v805_v5  ;;  %v521_v28 = vrot.slane %v516_v8, %v1666_v16  ;;  %v525_v29 = vrot.slane %v516_v8, %v1669_v17  ;;  %v529_v30 = vrot.slane %v516_v8, %v1672_v18 }
 0x293   : > { %v821_v11 = vcombine.low %v812_v9, %v819_v15  ;;  %v533_v32 = vrot.slane %v516_v8, %v1675_v19  ;;  %v537_v35 = vrot.slane %v516_v8, %v1678_v20  ;;  %v541_v37 = vrot.slane %v516_v8, %v1681_v21  ;;  %v865_v15 = vld [vmem:[#allocation2] sm:$0x1] }
 0x294   : > { %v828_v39 = vrot.slane %v820_v26, %v1690_v25  ;;  %v545_v40 = vrot.slane %v516_v8, %v1684_v22  ;;  %v549_v41 = vrot.slane %v516_v8, %v1687_v23  ;;  %v550_v42 = vcombine.low %v521_v28, %v525_v29  ;;  %v877_v28 = vld [vmem:[%s358_s10] sm:$0x1] }
 0x295   : > { %v835_v43 = vrot.slane %v821_v11, %v1690_v25  ;;  %v551_v44 = vcombine.low %v529_v30, %v533_v32  ;;  %v552_v17 = vcombine.low %v537_v35, %v541_v37  ;;  %v878_v11 = vld [vmem:[%s361_s29] sm:$0x1] }
 0x296   : > { %v553_v45 = vcombine.low %v545_v40, %v549_v41  ;;  %v560_v18 = vrot.slane %v550_v42, %v1690_v25 }
 0x297   : > { %v836_v46 = vcombine.low %v828_v39, %v835_v43  ;;  %v567_v19 = vrot.slane %v551_v44, %v1690_v25  ;;  %v574_v20 = vrot.slane %v552_v17, %v1690_v25 }
 0x298   : > { %v581_v21 = vrot.slane %v553_v45, %v1690_v25 }
 0x299   : > { %838 = vperm.xlu1 %1322, %v836_v46   ;;  %v582_v22 = vcombine.low %v560_v18, %v567_v19 }
 0x29a   : > { %v583_v47 = vcombine.low %v574_v20, %v581_v21 }
 0x29b   : > { %v590_v23 = vrot.slane %v582_v22, %v1690_v25 }
 0x29c   : > { %v597_v48 = vrot.slane %v583_v47, %v1690_v25 }
 0x29d   : > { %882 = vperm.xlu1 %1322, %v879_v6   ;;  %v735_v6 = vmul.f32 1.442695, %v734_v33  ;;  %v499_v33 = vld [vmem:[#allocation3] sm:$0x1] }
 0x29e   : > { %v598_v50 = vcombine.low %v590_v23, %v597_v48 }
 0x29f   : > { %1334 = vpow2.f32 %v735_v6 }
 0x2a0   : > { %600 = vperm.xlu0 %1323, %v598_v50   ;;  %1336 = vpow2.f32 %v497_v14 }
 0x2a1   : > { %973 = vperm.xlu1 %1322, %v1234_v49  }
 0x2a5   : > { %1073 = vperm.xlu1 %1322, %v1333_v3  }
 0x2a9   : > { %v1335_v54 = vpop.eup %1334 }
 0x2aa   : > { %v738_v57 = vmul.f32 %v1335_v54, %v737_v55  ;;  %v1337_v31 = vpop.eup %1336 }
 0x2ab   : > { %v500_v36 = vmul.f32 %v1337_v31, %v499_v33 }
 0x318   : > { %v839_v7 = vpop.permute.xlu1 %838 }
 0x319   : > { %v843_v53 = vrot.slane %v839_v7, %v1733_v13 }
 0x31b   : > { %v850_v56 = vrot.slane %v843_v53, %v1690_v25 }
 0x31c   : > { %v883_v9 = vpop.permute.xlu1 %882 }
 0x31d   : > { %v857_v58 = vrot.slane %v850_v56, %v1690_v25  ;;  %v887_v26 = vrot.slane %v883_v9, %v1666_v16 }
 0x31f   : > { %v859_v59 = vadd.f32 %v857_v58, %v738_v57  ;;  %v601_v60 = vpop.permute.xlu0 %600  ;;  %vm888_vm5 = vcmp.lt.s32.totalorder %v1729_v12, %v887_v26 }
 0x320   : > { %v605_v27 = vrot.slane %v601_v60, %v1733_v13  ;;  %v1230_v35 = vsel %vm888_vm5, 1.0, %v1463_v10  ;;  %v974_v40 = vpop.permute.xlu1 %973 }
 0x321   : > { %860 = vst.msk [vmem:[#allocation5] sm:$0x1] %vm372_vm0, %v859_v59  ;;  %v978_v44 = vrot.slane %v974_v40, %v1666_v16 }
 0x322   : > { %v612_v34 = vrot.slane %v605_v27, %v1690_v25 }
 0x323   : > { %vm979_vm6 = vcmp.eq.s32.totalorder %v1729_v12, %v978_v44 }
 0x324   : > { %v619_v38 = vrot.slane %v612_v34, %v1690_v25  ;;  %v1074_v23 = vpop.permute.xlu1 %1073 }
 0x325   : > { %v1079_v49 = vrot.slane %v1074_v23, %v1666_v16 }
 0x326   : > { %v621_v61 = vadd.f32 %v619_v38, %v500_v36 }
 0x328   : > { %623 = vst.msk [vmem:[#allocation3] sm:$0x1] %vm372_vm0, %v621_v61  ;;  %v871_v62 = vld [vmem:[#allocation5] sm:$0x1] }
 0x329   : > { %1338 = vlog2.f32 %v871_v62 }
 0x32f   : > { %v866_v63 = vld [vmem:[#allocation3] sm:$0x1] }
 0x330   : > { %1340 = vlog2.f32 %v866_v63 }
 0x333   : > { %v1339_v0 = vpop.eup %1338 }
 0x334   : > { %v873_v13 = vmul.f32 0.6931472, %v1339_v0 }
 0x336   : > { %v874_v2 = vadd.f32 %v873_v13, %v870_v1 }
 0x338   : > { %v876_v5 = vmul.f32 0.8, %v874_v2 }
 0x33a   : > { %v1341_v8 = vpop.eup %1340  ;;  %1247 = vmatmul.mubr.msk.f32.vlgmr.msra.gmra.mrb[0].mxu0 %vm897_vm4, %v876_v5  ;;  %v980_v45 = vsub.f32 %v878_v11, %v876_v5 }
 0x33b   : > { %v868_v25 = vmul.f32 0.6931472, %v1341_v8 }
 0x33d   : > { %v869_v24 = vadd.f32 %v868_v25, %v865_v15 }
 0x33f   : > { %v875_v29 = vmul.f32 0.8, %v869_v24 }
 0x341   : > { %v880_v30 = vsub.f32 %v877_v28, %v875_v29 }
 0x343   : > { %v988_v32 = vsub.f32 %v880_v30, %v878_v11 }
 0x345   : > { %v989_v37 = vmul.f32 %v1230_v35, %v988_v32 }
 0x347   : > { %1252 = vmatmul.mubr.msk.f32.vlgmr.msra.gmra.mrb[0].mxu1 %vm897_vm4, %v989_v37 }
 0x40d   : > { %v967_v39 = vpop.f32.mrb[0].mxu0 }
 0x40e   : > { %v981_v41 = vmul.f32 0.95, %v967_v39  ;;  %v1248_v42 = vpop.f32.mrb[1].mxu0 }
 0x410   : > { %v982_v43 = vsub.f32 %v981_v41, %v876_v5 }
 0x412   : > { %v983_v17 = vadd.f32 %v982_v43, %v878_v11 }
 0x414   : > { %v984_v18 = vsel %vm979_vm6, %v980_v45, %v983_v17 }
 0x415   : > { %v985_v46 = vsub.f32 %v880_v30, %v984_v18 }
 0x417   : > { %v986_v10 = vmul.f32 %v985_v46, %v985_v46 }
 0x41a   : > { %v1059_v19 = vpop.f32.mrb[0].mxu1 }
 0x41b   : > { %v1060_v20 = vadd.f32 %v1059_v19, %v876_v5  ;;  %v1253_v21 = vpop.f32.mrb[1].mxu1 }
 0x41d   : > { %v1063_v22 = vmul.f32 %v1060_v20, %v1060_v20 }
 0x41f   : > { %v1064_v47 = vadd.f32 %v1063_v22, %v986_v10 }
 0x421   : > { %v1065_v48 = vmul.f32 0.5, %v1064_v47 }
 0x423   : > { %v1069_v50 = vmul.f32 %v1230_v35, %v1065_v48 }
 0x425   : > { %v1080_v3 = vmul.f32 %v1079_v49, %v1069_v50 }
 0x427   : > { %v1081_v4 = vsel %vm372_vm0, %v1080_v3, 0.0 }
 0x428   : > { %1082 = vadd.xlane.f32.xlu1 %v1081_v4 }
 0x4b5   : > { %v1083_v51 = vpop.xlane.xlu1 %1082 }
 0x4b6   : > { %v1084_v12 = vrot.slane %v1083_v51, 4 }
 0x4b8   : > { %v1085_v52 = vadd.f32 %v1084_v12, %v1083_v51 }
 0x4ba   : > { %v1086_v6 = vrot.slane %v1085_v52, 2 }
 0x4bc   : > { %v1087_v14 = vadd.f32 %v1086_v6, %v1085_v52 }
 0x4be   : > { %v1088_v7 = vrot.slane %v1087_v14, 1 }
 0x4c0   : > { %v1089_v53 = vadd.f32 %v1088_v7, %v1087_v14 }
 0x4c2   : > { %1254 = vpush %v1089_v53 }
 0x4f3   : > { %s1255_s14 = spop %1254 }
 0x4f4   : > { %v1091_v16 = vstv %s1255_s14 }
 0x4f5   : > { %1093 = vst.msk [vmem:[%s367_s19] sm:$0x1] %vm1092_vm7, %v1091_v16 }
 0x4f6 PF: > { %s22_s26 = sadd.s32 1, %s1456_s26   ;;  %s1879_s21 = smov %s1440_s22 }
 0x4f7   : > { %p19_p9 = scmp.ge.s32.totalorder %s22_s26, 4   ;;  %s1880_s22 = smov %s1444_s23 }
 0x4f8   : > { %s1881_s23 = smov %s1550_s9  ;;  %s1882_s24 = smov %s1452_s25 }
 0x4f9   : > { %s1883_s25 = smov %s1885_s28  ;;  %21 = sbr.rel (!%p19_p9) target bundleno = 6 (0x6), region = 114 }
 0x500   :  { %1111 = vsyncpa [#allocation7], 1 }
 0x501   :  { %1113 = vsyncpa [#allocation7 + $0x1], 1 }
 0x502   :  { %1114 = vsyncpa [#allocation9], 1 }
 0x503   :  { %1116 = vsyncpa [#allocation9 + $0x1], 1 }

</bundles_post_ra>
